<compile_context>
chip_gen: v7x
topology: tpu7x:2x2x1
jax: 0.10.0
libtpu: 0.0.40
codegen_flags: <defaults>
</compile_context>

<pallas_src>
import functools

import jax
import jax.numpy as jnp
from jax.experimental import pallas as pl
from jax.experimental.pallas import tpu as pltpu


def _round_up(x: int, m: int) -> int:
    return (x + m - 1) // m * m


def _mlp_kernel(x_ref, w_ref, b_ref, o_ref, acc_ref, *,
                activation_fn, n_activation_applications,
                output_activation_fn, precision):
    k = pl.program_id(2)

    @pl.when(k == 0)
    def _():
        acc_ref[...] = jnp.zeros_like(acc_ref)

    # "Hidden layers": the module only ever applies activation_fn (the hidden
    # Linear layers never make it into the Sequential), so this is pure
    # element-wise VPU work.  For ReLU it is collapsed to a single pass.
    h = x_ref[...]
    if activation_fn is not None:
        for _ in range(n_activation_applications):
            h = activation_fn(h)

    # MXU matmul in native operand dtype, f32 accumulation in VMEM scratch.
    acc_ref[...] += jnp.dot(h, w_ref[...],
                            preferred_element_type=jnp.float32,
                            precision=precision)

    @pl.when(k == pl.num_programs(2) - 1)
    def _():
        out = acc_ref[...] + b_ref[...].astype(jnp.float32)
        if output_activation_fn is not None:
            out = output_activation_fn(out)  # caller-supplied, runs once per output tile
        o_ref[...] = out.astype(o_ref.dtype)


def mlp_forward(x, w, b, *, n_layers, activation_fn=None,
                output_activation_fn=None, activation_is_idempotent=True,
                precision=None, tm_max=256, tk_max=512, tn_max=256):
    """x: (B, D_in), w: (D_in, D_out), b: (1, D_out) -> (B, D_out)."""
    B, D_in = x.shape
    Kw, D_out = w.shape
    assert Kw == D_in, "weight first dim must match input feature dim"
    assert b.shape == (1, D_out)

    # Tile sizes: lane dims are multiples of 128 (vreg / MXU width), sublane a
    # multiple of 8.  Caps keep the pipelined footprint well inside VMEM.
    tm = min(_round_up(B, 8), tm_max)
    tk = min(_round_up(D_in, 128), tk_max)
    tn = min(_round_up(D_out, 128), tn_max)

    B_p = _round_up(B, tm)
    K_p = _round_up(D_in, tk)
    N_p = _round_up(D_out, tn)

    # Zero-pad to tile-aligned, lane-dense shapes; zero pads contribute nothing
    # to x @ w + b, and the valid region is sliced back out below.
    if (B_p, K_p) != (B, D_in):
        x = jnp.pad(x, ((0, B_p - B), (0, K_p - D_in)))
    if (K_p, N_p) != (D_in, D_out):
        w = jnp.pad(w, ((0, K_p - D_in), (0, N_p - D_out)))
    if N_p != D_out:
        b = jnp.pad(b, ((0, 0), (0, N_p - D_out)))

    grid = (B_p // tm, N_p // tn, K_p // tk)  # batch outermost, K innermost

    if n_layers <= 1 or activation_fn is None:
        n_acts = 0
    else:
        n_acts = 1 if activation_is_idempotent else (n_layers - 1)

    kernel = functools.partial(
        _mlp_kernel,
        activation_fn=activation_fn if n_acts > 0 else None,
        n_activation_applications=n_acts,
        output_activation_fn=output_activation_fn,
        precision=precision,
    )

    itemsize = jnp.dtype(x.dtype).itemsize
    cost = pl.CostEstimate(
        flops=2 * B_p * K_p * N_p,
        transcendentals=(B_p * N_p) if output_activation_fn is not None else 0,
        bytes_accessed=(B_p * K_p + K_p * N_p + N_p + B_p * N_p) * itemsize,
    )

    # VMEM budget: double-buffered x/w/b tiles + output tile + f32 accumulator,
    # with 2x headroom; clamped below v7x's 64 MiB physical VMEM, never below
    # the 32 MiB scoped default.
    tile_bytes = (2 * (tm * tk + tk * tn + tn) * itemsize
                  + 2 * tm * tn * itemsize + tm * tn * 4)
    vmem_limit = int(min(max(32 * 1024 * 1024, 2 * tile_bytes),
                         60 * 1024 * 1024))

    out_padded = pl.pallas_call(
        kernel,
        out_shape=jax.ShapeDtypeStruct((B_p, N_p), x.dtype),
        grid_spec=pltpu.PrefetchScalarGridSpec(
            num_scalar_prefetch=0,
            grid=grid,
            in_specs=[
                pl.BlockSpec((tm, tk), lambda i, j, k: (i, k)),
                pl.BlockSpec((tk, tn), lambda i, j, k: (k, j)),  # independent of batch idx
                pl.BlockSpec((1, tn), lambda i, j, k: (0, j)),
            ],
            out_specs=pl.BlockSpec((tm, tn), lambda i, j, k: (i, j)),
            scratch_shapes=[pltpu.VMEM((tm, tn), jnp.float32)],
        ),
        compiler_params=pltpu.CompilerParams(
            dimension_semantics=("parallel", "parallel", "arbitrary"),
            vmem_limit_bytes=vmem_limit,
        ),
        cost_estimate=cost,
    )(x, w, b)

    return out_padded[:B, :D_out]


if __name__ == "__main__":
    # Module config (input_dim must equal n_units for the module's forward to
    # be shape-consistent, given the never-appended hidden Linear layers).
    n_layers = 3
    n_units = 32
    input_dim = 32
    output_dim = 8
    batch = 8

    key = jax.random.PRNGKey(0)
    kx, kw, kb = jax.random.split(key, 3)

    # Deterministic init mirroring nn.Linear's default U(-1/sqrt(fan_in), ...)
    # for the only layer the module actually runs: Linear(n_units, output_dim).
    fan_in = input_dim if n_layers == 1 else n_units
    bound = 1.0 / jnp.sqrt(jnp.float32(fan_in))
    w = jax.random.uniform(kw, (fan_in, output_dim), jnp.float32, -bound, bound)
    b = jax.random.uniform(kb, (1, output_dim), jnp.float32, -bound, bound)
    x = jax.random.normal(kx, (batch, input_dim), jnp.float32)

    relu = lambda t: jnp.maximum(t, 0.0)

    y = mlp_forward(
        x, w, b,
        n_layers=n_layers,
        activation_fn=relu,
        output_activation_fn=None,          # module default: no output activation
        activation_is_idempotent=True,      # ReLU: n-1 applications == 1
        precision=jax.lax.Precision.HIGHEST,  # exact-f32 matmul for the check
    )
    y = jax.block_until_ready(y)

    # Pure-JAX reference of the same (faithful-to-the-module) forward pass.
    h_ref = x
    for _ in range(n_layers - 1):
        h_ref = jnp.maximum(h_ref, 0.0)
    y_ref = h_ref @ w + b

    assert y.shape == (batch, output_dim)
    assert jnp.allclose(y, y_ref, atol=1e-5, rtol=1e-5), float(
        jnp.max(jnp.abs(y - y_ref)))
    print("KERNEL_OK")
</pallas_src>

<mosaic_0001>
module attributes {stable_mosaic.version = 11 : i64} {
  func.func @_mlp_kernel(%arg0: i32, %arg1: i32, %arg2: i32, %arg3: memref<8x128xf32, #tpu.memory_space<vmem>>, %arg4: memref<128x128xf32, #tpu.memory_space<vmem>>, %arg5: memref<1x128xf32, #tpu.memory_space<vmem>>, %arg6: memref<8x128xf32, #tpu.memory_space<vmem>>, %arg7: memref<8x128xf32, #tpu.memory_space<vmem>>) attributes {dimension_semantics = [#tpu.dimension_semantics<parallel>, #tpu.dimension_semantics<parallel>, #tpu.dimension_semantics<arbitrary>], iteration_bounds = array<i64: 1, 1, 1>, scalar_prefetch = 0 : i64, scratch_operands = 1 : i64, tpu.core_type = #tpu.core_type<tc>, window_params = [{transform_indices = @transform_0, window_bounds = array<i64: 8, 128>}, {transform_indices = @transform_1, window_bounds = array<i64: 128, 128>}, {transform_indices = @transform_2, window_bounds = array<i64: 1, 128>}, {transform_indices = @transform_3, window_bounds = array<i64: 8, 128>}]} {
    %c0_i32 = arith.constant 0 : i32
    %0 = arith.cmpi eq, %arg2, %c0_i32 : i32
    %1 = arith.extui %0 : i1 to i32
    %c0_i32_0 = arith.constant 0 : i32
    %2 = arith.cmpi ne, %1, %c0_i32_0 : i32
    scf.if %2 {
      %cst_11 = arith.constant 0.000000e+00 : f32
      %14 = vector.broadcast %cst_11 : f32 to vector<8x128xf32>
      %c0_12 = arith.constant 0 : index
      %c0_13 = arith.constant 0 : index
      %15 = vector.load %arg7[%c0_12, %c0_13] : memref<8x128xf32, #tpu.memory_space<vmem>>, vector<8x128xf32>
      tpu.vector_store %arg7[%c0_12, %c0_13], %14 {strides = array<i32>} : memref<8x128xf32, #tpu.memory_space<vmem>>, vector<8x128xf32>,
    } else {
    }
    %c0 = arith.constant 0 : index
    %c0_1 = arith.constant 0 : index
    %3 = vector.load %arg3[%c0, %c0_1] : memref<8x128xf32, #tpu.memory_space<vmem>>, vector<8x128xf32>
    %cst = arith.constant 0.000000e+00 : f32
    %4 = vector.broadcast %cst : f32 to vector<8x128xf32>
    %5 = arith.maximumf %3, %4 : vector<8x128xf32>
    %c0_2 = arith.constant 0 : index
    %c0_3 = arith.constant 0 : index
    %6 = vector.load %arg7[%c0_2, %c0_3] : memref<8x128xf32, #tpu.memory_space<vmem>>, vector<8x128xf32>
    %c0_4 = arith.constant 0 : index
    %c0_5 = arith.constant 0 : index
    %7 = vector.load %arg4[%c0_4, %c0_5] : memref<128x128xf32, #tpu.memory_space<vmem>>, vector<128x128xf32>
    %cst_6 = arith.constant dense<0.000000e+00> : vector<8x128xf32>
    %8 = tpu.matmul %5, %7, %cst_6 {dimension_numbers = #tpu.dot_dimension_numbers<[1], [0], [0], [1], [0, 0, 1, 1], [], []>, precision = #tpu.contract_precision<fp32>} : vector<8x128xf32>, vector<128x128xf32>, vector<8x128xf32> -> vector<8x128xf32>
    %9 = arith.addf %6, %8 : vector<8x128xf32>
    %c0_7 = arith.constant 0 : index
    %c0_8 = arith.constant 0 : index
    %10 = vector.load %arg7[%c0_7, %c0_8] : memref<8x128xf32, #tpu.memory_space<vmem>>, vector<8x128xf32>
    tpu.vector_store %arg7[%c0_7, %c0_8], %9 {strides = array<i32>} : memref<8x128xf32, #tpu.memory_space<vmem>>, vector<8x128xf32>,
    %c0_i32_9 = arith.constant 0 : i32
    %11 = arith.cmpi eq, %arg2, %c0_i32_9 : i32
    %12 = arith.extui %11 : i1 to i32
    %c0_i32_10 = arith.constant 0 : i32
    %13 = arith.cmpi ne, %12, %c0_i32_10 : i32
    scf.if %13 {
      %c0_11 = arith.constant 0 : index
      %c0_12 = arith.constant 0 : index
      %14 = vector.load %arg7[%c0_11, %c0_12] : memref<8x128xf32, #tpu.memory_space<vmem>>, vector<8x128xf32>
      %c0_13 = arith.constant 0 : index
      %c0_14 = arith.constant 0 : index
      %15 = vector.load %arg5[%c0_13, %c0_14] : memref<1x128xf32, #tpu.memory_space<vmem>>, vector<1x128xf32>
      %16 = vector.broadcast %15 : vector<1x128xf32> to vector<8x128xf32>
      %17 = arith.addf %14, %16 : vector<8x128xf32>
      %c0_15 = arith.constant 0 : index
      %c0_16 = arith.constant 0 : index
      %18 = vector.load %arg6[%c0_15, %c0_16] : memref<8x128xf32, #tpu.memory_space<vmem>>, vector<8x128xf32>
      tpu.vector_store %arg6[%c0_15, %c0_16], %17 {strides = array<i32>} : memref<8x128xf32, #tpu.memory_space<vmem>>, vector<8x128xf32>,
    } else {
    }
    return
  }
  func.func @transform_0(%arg0: i32, %arg1: i32, %arg2: i32) -> (i32, i32) {
    %c0_i32 = arith.constant 0 : i32
    return %arg0, %arg2 : i32, i32
  }
  func.func @transform_1(%arg0: i32, %arg1: i32, %arg2: i32) -> (i32, i32) {
    %c0_i32 = arith.constant 0 : i32
    return %arg2, %arg1 : i32, i32
  }
  func.func @transform_2(%arg0: i32, %arg1: i32, %arg2: i32) -> (i32, i32) {
    %c0_i32 = arith.constant 0 : i32
    %c0_i32_0 = arith.constant 0 : i32
    return %c0_i32, %arg1 : i32, i32
  }
  func.func @transform_3(%arg0: i32, %arg1: i32, %arg2: i32) -> (i32, i32) {
    %c0_i32 = arith.constant 0 : i32
    return %arg0, %arg1 : i32, i32
  }
}

</mosaic_0001>

<bundles_post_ra>
// kernel: tpu_custom_call.1
= control target key start
LH: loop header
LB: loop body
LE: loop exit
PB: predicated region body
PF: predicated region fallthrough
CT: control target
= control target key end

     0   :  { %8 = vsyncpa [#allocation4], 0  ;;  %s1607_s0 = inlined_call_operand.hbm [shape: f32[8,128], index: 0, kind: input, shape index: {}]   ;;  %s1608_s1 = inlined_call_operand.hbm [shape: f32[128,128], index: 1, kind: input, shape index: {}]   ;;  %s1609_s2 = inlined_call_operand.vmem [shape: f32[1,128], index: 2, kind: input, shape index: {}]   ;;  %s1610_s3 = inlined_call_operand.hbm [shape: f32[8,128], index: 3, kind: output, shape index: {}]  }
   0x1   :  { %9 = vsyncpa [#allocation7], 0 }
   0x2   :  { %10 = vsyncpa [#allocation5], 0  ;;  %s1274_s12 = smov [#allocation3]   ;;  %s1275_s14 = smov [#allocation6]  }
   0x3   :  { %s17_s13 = sshll.u32 %s1274_s12, 4  ;;  %s26_s15 = sshll.u32 %s1275_s14, 4  ;;  %s18_s13 = int_to_ptr.vmem [resolvable:$true] %s17_s13  ;;  %s1302_s15 = int_to_ptr.vmem [resolvable:$true] %s26_s15 }
   0x4   :  { %s1202_s18 = scalar_lea.hbm %s1607_s0, 128 }
   0x5   :  { %p1203_p0 = scmp.ne.s32.totalorder %s1607_s0, %s1202_s18  ;;  %p1206_p1 = scmp.lt.u32.totalorder %s1202_s18, %s1607_s0 }
   0x7   :  { %p1208_p2 = pnand %p1206_p1, %p1203_p0 }
   0x9   :  { %1211 = shalt.err (!%p1208_p2)
}
   0xa   :  { %s1212_s23 = scalar_lea.vmem %s18_s13, 128  ;;  %p1217_p4 = scmp.lt.s32.totalorder %s18_s13, %s18_s13 }
   0xb   :  { %p1213_p3 = scmp.ne.s32.totalorder %s18_s13, %s1212_s23  ;;  %p1218_p5 = scmp.lt.s32.totalorder %s1212_s23, %s1212_s23 }
   0xd   :  { %p1219_p6 = por %p1218_p5, %p1217_p4 }
   0xf   :  { %p1220_p7 = pnand %p1219_p6, %p1213_p3 }
  0x11   :  { %1223 = shalt.err (!%p1220_p7)
}
  0x12   :  { %20 = dma.hbm_to_vmem [thread:$0]  %s1607_s0, 128, %s18_s13, [#allocation4]  }
  0x13   :  { %s1224_s28 = scalar_lea.hbm %s1608_s1, 2048 }
  0x14   :  { %p1225_p8 = scmp.ne.s32.totalorder %s1608_s1, %s1224_s28  ;;  %p1228_p9 = scmp.lt.u32.totalorder %s1224_s28, %s1608_s1 }
  0x16   :  { %p1230_p10 = pnand %p1228_p9, %p1225_p8 }
  0x18   :  { %1233 = shalt.err (!%p1230_p10)
}
  0x19   :  { %s1234_s6 = scalar_lea.vmem %s1302_s15, 2048  ;;  %p1239_p12 = scmp.lt.s32.totalorder %s1302_s15, %s1302_s15 }
  0x1a   :  { %p1235_p11 = scmp.ne.s32.totalorder %s1302_s15, %s1234_s6  ;;  %p1240_p13 = scmp.lt.s32.totalorder %s1234_s6, %s1234_s6 }
  0x1c   :  { %p1241_p0 = por %p1240_p13, %p1239_p12 }
  0x1e   :  { %p1242_p1 = pnand %p1241_p0, %p1235_p11 }
  0x20   :  { %1245 = shalt.err (!%p1242_p1)
}
  0x21   :  { %s1276_s0 = smov 128   ;;  %s1277_s7 = smov 8  }
  0x22   :  { %32 = dma.hbm_to_vmem [thread:$0]  %s1608_s1, 2048, %s1302_s15, [#allocation7], %s1276_s0, %s1276_s0, %s1277_s7  }
  0x23   :  { %1268 = dma.done.wait [#allocation4], 128  }
  0x24   :  { %1269 = vsyncadd [#allocation4], 4294967168 }
  0x25   :  { %1270 = dma.done.wait [#allocation7], 2048  }
  0x26   :  { %1271 = vsyncadd [#allocation7], 4294965248  ;;  %v1278_v0 = vmov 0.0|0.0   ;;  %vm1279_vm0 = vmmov 0   ;;  %v1280_v1 = vmov 0.0   ;;  %v49_v2 = vld [vmem:[#allocation6] sm:$0xff] }
  0x27   :  { %1050 = vmatprep.subr.bf16.mxu0 %v1278_v0  ;;  %1074 = vmatprep.subr.bf16.mxu1 %v1278_v0  ;;  %v50_v3 = vld [vmem:[#allocation6 + $0x8] sm:$0xff]  ;;  %v51_v4 = vld [vmem:[#allocation6 + $0x10] sm:$0xff]  ;;  %v66_v5 = vand.u32 4294901760, %v49_v2  ;;  %v52_v7 = vld [vmem:[#allocation6 + $0x18] sm:$0xff]  ;;  %s1281_s11 = smov [#allocation8]  }
  0x28   :  { %872 = vmatprep.mubr.msk.f32.mxu0 %vm1279_vm0, %v1280_v1  ;;  %907 = vmatprep.mubr.msk.f32.mxu1 %vm1279_vm0, %v1280_v1  ;;  %v69_v6 = vand.u32 4294901760, %v50_v3  ;;  %v72_v8 = vand.u32 4294901760, %v51_v4  ;;  %v53_v9 = vld [vmem:[#allocation6 + $0x20] sm:$0xff]  ;;  %v54_v10 = vld [vmem:[#allocation6 + $0x28] sm:$0xff]  ;;  %v75_v11 = vand.u32 4294901760, %v52_v7  ;;  %v55_v14 = vld [vmem:[#allocation6 + $0x30] sm:$0xff] }
  0x29   :  { %v78_v12 = vand.u32 4294901760, %v53_v9  ;;  %v81_v13 = vand.u32 4294901760, %v54_v10  ;;  %v1341_v16 = vsub.f32 %v49_v2, %v66_v5  ;;  %v56_v19 = vld [vmem:[#allocation6 + $0x38] sm:$0xff]  ;;  %v57_v20 = vld [vmem:[#allocation6 + $0x40] sm:$0xff]  ;;  %v84_v26 = vand.u32 4294901760, %v55_v14  ;;  %v58_v27 = vld [vmem:[#allocation6 + $0x48] sm:$0xff] }
  0x2a   :  { %v1339_v15 = vpack.c.bf16 %v69_v6, %v66_v5  ;;  %v1343_v17 = vsub.f32 %v50_v3, %v69_v6  ;;  %v1345_v18 = vsub.f32 %v51_v4, %v72_v8  ;;  %v1347_v21 = vpack.c.bf16 %v75_v11, %v72_v8  ;;  %v59_v40 = vld [vmem:[#allocation6 + $0x50] sm:$0xff]  ;;  %v60_v41 = vld [vmem:[#allocation6 + $0x58] sm:$0xff]  ;;  %v61_v50 = vld [vmem:[#allocation6 + $0x60] sm:$0xff]  ;;  %s727_s12 = sshll.u32 %s1281_s11, 4  ;;  %s728_s12 = int_to_ptr.vmem [resolvable:$true] %s727_s12 }
  0x2b   :  { %v1349_v22 = vsub.f32 %v52_v7, %v75_v11  ;;  %v1352_v23 = vsub.f32 %v53_v9, %v78_v12  ;;  %v159_v24 = vand.u32 4294901760, %v1341_v16  ;;  %v87_v28 = vand.u32 4294901760, %v56_v19  ;;  %v62_v59 = vld [vmem:[#allocation6 + $0x68] sm:$0xff]  ;;  %v63_v2 = vld [vmem:[#allocation6 + $0x70] sm:$0xff]  ;;  %v64_v7 = vld [vmem:[#allocation6 + $0x78] sm:$0xff]  ;;  %s1246_s13 = scalar_lea.vmem %s728_s12, 128  ;;  %p1251_p3 = scmp.lt.s32.totalorder %s728_s12, %s728_s12 }
  0x2c   :  { %1052 = vmatpush3.bf16.msra.mxu0 %v1339_v15  ;;  %v166_v25 = vand.u32 4294901760, %v1343_v17  ;;  %v173_v29 = vand.u32 4294901760, %v1345_v18  ;;  %v90_v31 = vand.u32 4294901760, %v57_v20  ;;  %v1359_v32 = vsub.f32 %v54_v10, %v81_v13  ;;  %p1247_p2 = scmp.ne.s32.totalorder %s728_s12, %s1246_s13  ;;  %p1252_p4 = scmp.lt.s32.totalorder %s1246_s13, %s1246_s13 }
  0x2d   :  { %1053 = vmatprep.subr.bf16.mxu0 %v1278_v0  ;;  %v180_v30 = vand.u32 4294901760, %v1349_v22  ;;  %v160_v33 = vsub.f32 %v1341_v16, %v159_v24  ;;  %v1367_v35 = vsub.f32 %v55_v14, %v84_v26  ;;  %v1369_v36 = vsub.f32 %v56_v19, %v87_v28 }
  0x2e   :  { %v167_v34 = vsub.f32 %v1343_v17, %v166_v25  ;;  %v174_v37 = vsub.f32 %v1345_v18, %v173_v29  ;;  %v93_v39 = vand.u32 4294901760, %v58_v27  ;;  %v1378_v42 = vpack.c.bf16 %v81_v13, %v78_v12  ;;  %p1253_p5 = por %p1252_p4, %p1251_p3 }
  0x2f   :  { %v181_v38 = vsub.f32 %v1349_v22, %v180_v30  ;;  %v161_v43 = vand.u32 4294901760, %v160_v33  ;;  %v1380_v45 = vpack.c.bf16 %v87_v28, %v84_v26  ;;  %v1383_v48 = vsub.f32 %v57_v20, %v90_v31 }
  0x30   :  { %1055 = vmatpush3.bf16.msra.mxu0 %v1347_v21  ;;  %v168_v44 = vand.u32 4294901760, %v167_v34  ;;  %v175_v46 = vand.u32 4294901760, %v174_v37  ;;  %v187_v49 = vand.u32 4294901760, %v1352_v23  ;;  %v194_v52 = vand.u32 4294901760, %v1359_v32  ;;  %p1254_p6 = pnand %p1253_p5, %p1247_p2 }
  0x31   :  { %1056 = vmatprep.subr.bf16.mxu0 %v1278_v0  ;;  %v182_v47 = vand.u32 4294901760, %v181_v38  ;;  %v96_v53 = vand.u32 4294901760, %v59_v40  ;;  %v99_v54 = vand.u32 4294901760, %v60_v41  ;;  %v1387_v55 = vsub.f32 %v58_v27, %v93_v39 }
  0x32   :  { %v1075_v51 = vpack.c.bf16 %v168_v44, %v161_v43  ;;  %v188_v56 = vsub.f32 %v1352_v23, %v187_v49  ;;  %v201_v57 = vand.u32 4294901760, %v1367_v35  ;;  %v208_v58 = vand.u32 4294901760, %v1369_v36 }
  0x33   :  { %v1078_v60 = vpack.c.bf16 %v182_v47, %v175_v46  ;;  %v1395_v61 = vpack.c.bf16 %v93_v39, %v90_v31  ;;  %v195_v62 = vsub.f32 %v1359_v32, %v194_v52  ;;  %v102_v63 = vand.u32 4294901760, %v61_v50  ;;  %v46_v31 = vld [vmem:[#allocation3] sm:$0xff] }
  0x34   :  { %1058 = vmatpush3.bf16.msra.mxu0 %v1378_v42  ;;  %1076 = vmatpush3.bf16.msra.mxu1 %v1075_v51  ;;  %v189_v3 = vand.u32 4294901760, %v188_v56  ;;  %v1402_v4 = vsub.f32 %v59_v40, %v96_v53  ;;  %v202_v5 = vsub.f32 %v1367_v35, %v201_v57  ;;  %v209_v6 = vsub.f32 %v1369_v36, %v208_v58 }
  0x35   :  { %1059 = vmatprep.subr.bf16.mxu0 %v1278_v0  ;;  %1077 = vmatprep.subr.bf16.mxu1 %v1278_v0  ;;  %v196_v8 = vand.u32 4294901760, %v195_v62  ;;  %v1410_v9 = vsub.f32 %v60_v41, %v99_v54  ;;  %v105_v10 = vand.u32 4294901760, %v62_v59  ;;  %v215_v11 = vand.u32 4294901760, %v1383_v48 }
  0x36   :  { %v203_v12 = vand.u32 4294901760, %v202_v5  ;;  %v210_v13 = vand.u32 4294901760, %v209_v6  ;;  %v222_v14 = vand.u32 4294901760, %v1387_v55  ;;  %v108_v19 = vand.u32 4294901760, %v63_v2 }
  0x37   :  { %v1081_v20 = vpack.c.bf16 %v196_v8, %v189_v3  ;;  %v1415_v26 = vsub.f32 %v61_v50, %v102_v63  ;;  %v1417_v27 = vsub.f32 %v62_v59, %v105_v10  ;;  %v111_v28 = vand.u32 4294901760, %v64_v7 }
  0x38   :  { %1061 = vmatpush3.bf16.msra.mxu0 %v1380_v45  ;;  %1079 = vmatpush3.bf16.msra.mxu1 %v1078_v60  ;;  %v216_v33 = vsub.f32 %v1383_v48, %v215_v11  ;;  %v223_v34 = vsub.f32 %v1387_v55, %v222_v14  ;;  %v229_v37 = vand.u32 4294901760, %v1402_v4  ;;  %v1428_v38 = vpack.c.bf16 %v99_v54, %v96_v53 }
  0x39   :  { %1062 = vmatprep.subr.bf16.mxu0 %v1278_v0  ;;  %1080 = vmatprep.subr.bf16.mxu1 %v1278_v0  ;;  %v1084_v39 = vpack.c.bf16 %v210_v13, %v203_v12  ;;  %v1430_v40 = vsub.f32 %v63_v2, %v108_v19  ;;  %v236_v41 = vand.u32 4294901760, %v1410_v9  ;;  %v47_v47 = vmax.f32 %v46_v31, 0.0 }
  0x3a   :  { %v217_v43 = vand.u32 4294901760, %v216_v33  ;;  %v224_v44 = vand.u32 4294901760, %v223_v34  ;;  %v230_v46 = vsub.f32 %v1402_v4, %v229_v37  ;;  %v1437_v50 = vsub.f32 %v64_v7, %v111_v28 }
  0x3b   :  { %v237_v51 = vsub.f32 %v1410_v9, %v236_v41  ;;  %v243_v53 = vand.u32 4294901760, %v1415_v26  ;;  %v250_v54 = vand.u32 4294901760, %v1417_v27  ;;  %v1446_v56 = vand.u32 4294901760, %v47_v47 }
  0x3c   :  { %1064 = vmatpush3.bf16.msra.mxu0 %v1395_v61  ;;  %1082 = vmatpush3.bf16.msra.mxu1 %v1081_v20  ;;  %v1448_v59 = vpack.c.bf16 %v105_v10, %v102_v63  ;;  %v1087_v60 = vpack.c.bf16 %v224_v44, %v217_v43  ;;  %v231_v62 = vand.u32 4294901760, %v230_v46  ;;  %v257_v3 = vand.u32 4294901760, %v1430_v40 }
  0x3d   :  { %1065 = vmatprep.subr.bf16.mxu0 %v1278_v0  ;;  %1083 = vmatprep.subr.bf16.mxu1 %v1278_v0  ;;  %v1451_v2 = vsub.f32 %v47_v47, %v1446_v56  ;;  %v238_v5 = vand.u32 4294901760, %v237_v51  ;;  %v244_v6 = vsub.f32 %v1415_v26, %v243_v53  ;;  %v251_v63 = vsub.f32 %v1417_v27, %v250_v54 }
  0x3e   :  { %v264_v7 = vand.u32 4294901760, %v1437_v50  ;;  %v1465_v10 = vpack.c.bf16 %v111_v28, %v108_v19  ;;  %v258_v13 = vsub.f32 %v1430_v40, %v257_v3  ;;  %v1102_v47 = vpack.c.bf16 %v1349_v22, %v1345_v18 }
  0x3f   :  { %v148_v8 = vand.u32 4294901760, %v1451_v2  ;;  %v1090_v20 = vpack.c.bf16 %v238_v5, %v231_v62  ;;  %v245_v31 = vand.u32 4294901760, %v244_v6  ;;  %v252_v33 = vand.u32 4294901760, %v251_v63 }
  0x40   :  { %1067 = vmatpush3.bf16.msra.mxu0 %v1428_v38  ;;  %1085 = vmatpush3.bf16.msra.mxu1 %v1084_v39  ;;  %v265_v34 = vsub.f32 %v1437_v50, %v264_v7  ;;  %v1099_v39 = vpack.c.bf16 %v1343_v17, %v1341_v16  ;;  %v259_v43 = vand.u32 4294901760, %v258_v13  ;;  %v1105_v51 = vpack.c.bf16 %v1359_v32, %v1352_v23 }
  0x41   :  { %1068 = vmatprep.subr.bf16.mxu0 %v1278_v0  ;;  %1086 = vmatprep.subr.bf16.mxu1 %v1278_v0  ;;  %v149_v12 = vsub.f32 %v1451_v2, %v148_v8  ;;  %v1093_v28 = vpack.c.bf16 %v252_v33, %v245_v31  ;;  %v1111_v62 = vpack.c.bf16 %v1387_v55, %v1383_v48 }
  0x42   :  { %v266_v44 = vand.u32 4294901760, %v265_v34  ;;  %v1114_v5 = vpack.c.bf16 %v1410_v9, %v1402_v4  ;;  %v1117_v6 = vpack.c.bf16 %v1417_v27, %v1415_v26  ;;  %v1120_v63 = vpack.c.bf16 %v1437_v50, %v1430_v40 }
  0x43   :  { %v150_v19 = vand.u32 4294901760, %v149_v12  ;;  %v1147_v12 = vpack.c.bf16 %v166_v25, %v159_v24  ;;  %v1150_v13 = vpack.c.bf16 %v180_v30, %v173_v29  ;;  %v1153_v16 = vpack.c.bf16 %v194_v52, %v187_v49 }
  0x44   :  { %1070 = vmatpush3.bf16.msra.mxu0 %v1448_v59  ;;  %1088 = vmatpush3.bf16.msra.mxu1 %v1087_v60  ;;  %v1096_v46 = vpack.c.bf16 %v266_v44, %v259_v43  ;;  %v1108_v60 = vpack.c.bf16 %v1369_v36, %v1367_v35  ;;  %v1156_v17 = vpack.c.bf16 %v208_v58, %v201_v57 }
  0x45   :  { %1071 = vmatprep.subr.bf16.mxu0 %v1278_v0  ;;  %1089 = vmatprep.subr.bf16.mxu1 %v1278_v0  ;;  %v1165_v18 = vpack.c.bf16 %v250_v54, %v243_v53 }
  0x48   :  { %1073 = vmatpush3.bf16.msra.mxu0 %v1465_v10  ;;  %1091 = vmatpush3.bf16.msra.mxu1 %v1090_v20 }
  0x49   :  { %1092 = vmatprep.subr.bf16.mxu1 %v1278_v0  ;;  %1098 = vmatprep.subr.bf16.mxu0 %v1278_v0 }
  0x4b   :  { %873 = vmatmul.mubr.f32.vlgmr.msra.gmra.mrb[0].mxu0 %v150_v19 }
  0x4c   :  { %1094 = vmatpush3.bf16.msra.mxu1 %v1093_v28  ;;  %1100 = vmatpush3.bf16.msra.mxu0 %v1099_v39 }
  0x4d   :  { %1095 = vmatprep.subr.bf16.mxu1 %v1278_v0  ;;  %1101 = vmatprep.subr.bf16.mxu0 %v1278_v0 }
  0x4e   :  { %942 = vmatprep.mubr.msk.f32.mxu0 %vm1279_vm0, %v1280_v1 }
  0x50   :  { %1097 = vmatpush3.bf16.msra.mxu1 %v1096_v46  ;;  %1103 = vmatpush3.bf16.msra.mxu0 %v1102_v47 }
  0x51   :  { %1104 = vmatprep.subr.bf16.mxu0 %v1278_v0  ;;  %1122 = vmatprep.subr.bf16.mxu1 %v1278_v0 }
  0x53   :  { %908 = vmatmul.mubr.f32.vlgmr.msra.gmra.mrb[0].mxu1 %v1446_v56 }
  0x54   :  { %1106 = vmatpush3.bf16.msra.mxu0 %v1105_v51  ;;  %1124 = vmatpush3.bf16.msra.mxu1 %v1339_v15 }
  0x55   :  { %1107 = vmatprep.subr.bf16.mxu0 %v1278_v0  ;;  %1125 = vmatprep.subr.bf16.mxu1 %v1278_v0 }
  0x56   :  { %977 = vmatprep.mubr.msk.f32.mxu1 %vm1279_vm0, %v1280_v1 }
  0x58   :  { %1109 = vmatpush3.bf16.msra.mxu0 %v1108_v60  ;;  %1127 = vmatpush3.bf16.msra.mxu1 %v1347_v21 }
  0x59   :  { %1110 = vmatprep.subr.bf16.mxu0 %v1278_v0  ;;  %1128 = vmatprep.subr.bf16.mxu1 %v1278_v0 }
  0x5c   :  { %1112 = vmatpush3.bf16.msra.mxu0 %v1111_v62  ;;  %1130 = vmatpush3.bf16.msra.mxu1 %v1378_v42 }
  0x5d   :  { %1113 = vmatprep.subr.bf16.mxu0 %v1278_v0  ;;  %1131 = vmatprep.subr.bf16.mxu1 %v1278_v0 }
  0x60   :  { %1115 = vmatpush3.bf16.msra.mxu0 %v1114_v5  ;;  %1133 = vmatpush3.bf16.msra.mxu1 %v1380_v45 }
  0x61   :  { %1116 = vmatprep.subr.bf16.mxu0 %v1278_v0  ;;  %1134 = vmatprep.subr.bf16.mxu1 %v1278_v0 }
  0x64   :  { %1118 = vmatpush3.bf16.msra.mxu0 %v1117_v6  ;;  %1136 = vmatpush3.bf16.msra.mxu1 %v1395_v61 }
  0x65   :  { %1119 = vmatprep.subr.bf16.mxu0 %v1278_v0  ;;  %1137 = vmatprep.subr.bf16.mxu1 %v1278_v0 }
  0x68   :  { %1121 = vmatpush3.bf16.msra.mxu0 %v1120_v63  ;;  %1139 = vmatpush3.bf16.msra.mxu1 %v1428_v38 }
  0x69   :  { %1140 = vmatprep.subr.bf16.mxu1 %v1278_v0  ;;  %1146 = vmatprep.subr.bf16.mxu0 %v1278_v0 }
  0x6b   :  { %943 = vmatmul.mubr.f32.vlgmr.msra.gmra.mrb[2].mxu0 %v1451_v2 }
  0x6c   :  { %1142 = vmatpush3.bf16.msra.mxu1 %v1448_v59  ;;  %1148 = vmatpush3.bf16.msra.mxu0 %v1147_v12 }
  0x6d   :  { %1143 = vmatprep.subr.bf16.mxu1 %v1278_v0  ;;  %1149 = vmatprep.subr.bf16.mxu0 %v1278_v0 }
  0x6e   :  { %1012 = vmatprep.mubr.msk.f32.mxu0 %vm1279_vm0, %v1280_v1 }
  0x70   :  { %1145 = vmatpush3.bf16.msra.mxu1 %v1465_v10  ;;  %1151 = vmatpush3.bf16.msra.mxu0 %v1150_v13 }
  0x71   :  { %1152 = vmatprep.subr.bf16.mxu0 %v1278_v0  ;;  %1170 = vmatprep.subr.bf16.mxu1 %v1278_v0 }
  0x73   :  { %978 = vmatmul.mubr.f32.vlgmr.msra.gmra.mrb[2].mxu1 %v148_v8 }
  0x74   :  { %1154 = vmatpush3.bf16.msra.mxu0 %v1153_v16  ;;  %1172 = vmatpush3.bf16.msra.mxu1 %v1339_v15  ;;  %v1159_v15 = vpack.c.bf16 %v222_v14, %v215_v11 }
  0x75   :  { %1155 = vmatprep.subr.bf16.mxu0 %v1278_v0  ;;  %1173 = vmatprep.subr.bf16.mxu1 %v1278_v0 }
  0x76   :  { %1047 = vmatprep.mubr.msk.f32.mxu1 %vm1279_vm0, %v1280_v1  ;;  %v1162_v1 = vpack.c.bf16 %v236_v41, %v229_v37 }
  0x78   :  { %1157 = vmatpush3.bf16.msra.mxu0 %v1156_v17  ;;  %1175 = vmatpush3.bf16.msra.mxu1 %v1347_v21  ;;  %v1168_v21 = vpack.c.bf16 %v264_v7, %v257_v3 }
  0x79   :  { %1158 = vmatprep.subr.bf16.mxu0 %v1278_v0  ;;  %1176 = vmatprep.subr.bf16.mxu1 %v1278_v0 }
  0x7c   :  { %1160 = vmatpush3.bf16.msra.mxu0 %v1159_v15  ;;  %1178 = vmatpush3.bf16.msra.mxu1 %v1378_v42 }
  0x7d   :  { %1161 = vmatprep.subr.bf16.mxu0 %v1278_v0  ;;  %1179 = vmatprep.subr.bf16.mxu1 %v1278_v0 }
  0x80   :  { %1163 = vmatpush3.bf16.msra.mxu0 %v1162_v1  ;;  %1181 = vmatpush3.bf16.msra.mxu1 %v1380_v45 }
  0x81   :  { %1164 = vmatprep.subr.bf16.mxu0 %v1278_v0  ;;  %1182 = vmatprep.subr.bf16.mxu1 %v1278_v0 }
  0x84   :  { %1166 = vmatpush3.bf16.msra.mxu0 %v1165_v18  ;;  %1184 = vmatpush3.bf16.msra.mxu1 %v1395_v61 }
  0x85   :  { %1167 = vmatprep.subr.bf16.mxu0 %v1278_v0  ;;  %1185 = vmatprep.subr.bf16.mxu1 %v1278_v0 }
  0x88   :  { %1169 = vmatpush3.bf16.msra.mxu0 %v1168_v21  ;;  %1187 = vmatpush3.bf16.msra.mxu1 %v1428_v38 }
  0x89   :  { %1188 = vmatprep.subr.bf16.mxu1 %v1278_v0 }
  0x8b   :  { %1013 = vmatmul.mubr.f32.vlgmr.msra.gmra.mrb[4].mxu0 %v1446_v56 }
  0x8c   :  { %1190 = vmatpush3.bf16.msra.mxu1 %v1448_v59 }
  0x8d   :  { %1191 = vmatprep.subr.bf16.mxu1 %v1278_v0  ;;  %v737_v0 = vld [vmem:[%s1609_s2] ss:$0 sm:$0xff] }
  0x90   :  { %1193 = vmatpush3.bf16.msra.mxu1 %v1465_v10 }
  0x93   :  { %1048 = vmatmul.mubr.f32.vlgmr.msra.gmra.mrb[4].mxu1 %v1446_v56 }
 0x11e   :  { %v152_v22 = vpop.f32.mrb[0].mxu0 }
 0x11f   :  { %v874_v23 = vpop.f32.mrb[1].mxu0 }
 0x126   :  { %v303_v24 = vpop.f32.mrb[0].mxu1 }
 0x127   :  { %v304_v25 = vadd.f32 %v303_v24, %v152_v22  ;;  %v909_v29 = vpop.f32.mrb[1].mxu1 }
 0x13e   :  { %v407_v30 = vpop.f32.mrb[2].mxu0 }
 0x13f   :  { %v408_v32 = vadd.f32 %v407_v30, %v304_v25  ;;  %v944_v35 = vpop.f32.mrb[3].mxu0 }
 0x146   :  { %v496_v36 = vpop.f32.mrb[2].mxu1 }
 0x147   :  { %v497_v42 = vadd.f32 %v496_v36, %v408_v32  ;;  %v979_v45 = vpop.f32.mrb[3].mxu1 }
 0x15e   :  { %v615_v48 = vpop.f32.mrb[4].mxu0 }
 0x15f   :  { %v616_v49 = vadd.f32 %v615_v48, %v497_v42  ;;  %v1014_v52 = vpop.f32.mrb[5].mxu0 }
 0x166   :  { %v702_v55 = vpop.f32.mrb[4].mxu1 }
 0x167   :  { %v703_v57 = vadd.f32 %v702_v55, %v616_v49  ;;  %v1049_v58 = vpop.f32.mrb[5].mxu1 }
 0x169   :  { %v719_v61 = vadd.f32 %v737_v0, %v703_v57 }
 0x16b   :  { %720 = vst [vmem:[#allocation8] sm:$0xff] %v719_v61 }
 0x16c   :  { %1257 = shalt.err (!%p1254_p6)
}
 0x16d   :  { %s1258_s16 = scalar_lea.hbm %s1610_s3, 128 }
 0x16e   :  { %p1259_p7 = scmp.ne.s32.totalorder %s1610_s3, %s1258_s16  ;;  %p1262_p8 = scmp.lt.u32.totalorder %s1258_s16, %s1610_s3 }
 0x170   :  { %p1264_p9 = pnand %p1262_p8, %p1259_p7 }
 0x172   :  { %1267 = shalt.err (!%p1264_p9)
}
 0x173   :  { %730 = dma.vmem_to_hbm [thread:$0]  %s728_s12, 128, %s1610_s3, [#allocation5]  }
 0x174   :  { %1272 = dma.done.wait [#allocation5], 128  }
 0x175   :  { %1273 = vsyncadd [#allocation5], 4294967168 }
 0x176   :  { %734 = vsyncpa [#allocation4], 1 }
 0x177   :  { %735 = vsyncpa [#allocation7], 1 }
 0x178   :  { %736 = vsyncpa [#allocation5], 1 }

</bundles_post_ra>
